<compile_context>
chip_gen: v6e
topology: v6e:2x2x1
jax: 0.10.0
libtpu: 0.0.40
codegen_flags: <defaults>
</compile_context>

<pallas_src>
import math
from functools import partial

import jax
import jax.numpy as jnp
from jax import lax
from jax.experimental import pallas as pl
from jax.experimental.pallas import tpu as pltpu


VMEM_LIMIT = 48 * 1024 * 1024   # > v5e's 16 MiB scoped default, < v7x's 64 MiB physical


# ----------------------------------------------------------------------------
# helpers
# ----------------------------------------------------------------------------
def _round_up(x, m):
    return (x + m - 1) // m * m


def _pick_block(n, target, quanta=(256, 128, 8)):
    """Largest block <= target that divides n and is a multiple of one of
    `quanta` (256 preferred for the v6e/v7x MXU, 128 fallback).  Returns n
    (untiled) if n <= target or no aligned divisor exists."""
    if n <= target:
        return n
    for q in quanta:
        best = None
        d = q
        while d <= target:
            if n % d == 0:
                best = d
            d += q
        if best is not None:
            return best
    return n


def _erf_approx(x):
    # Abramowitz & Stegun 7.1.26 rational approximation (|err| <= 1.5e-7);
    # exact erf may not lower on all Mosaic versions.
    a1, a2, a3, a4, a5 = 0.254829592, -0.284496736, 1.421413741, -1.453152027, 1.061405429
    p = 0.3275911
    sign = jnp.where(x >= 0.0, 1.0, -1.0)
    ax = jnp.abs(x)
    t = 1.0 / (1.0 + p * ax)
    poly = ((((a5 * t + a4) * t + a3) * t + a2) * t + a1) * t
    return sign * (1.0 - poly * jnp.exp(-ax * ax))


def _gelu_exact(x):
    # nn.GELU() (exact erf form) semantics.
    return 0.5 * x * (1.0 + _erf_approx(x * (1.0 / math.sqrt(2.0))))


def _layernorm(x, g, b, eps):
    mu = jnp.mean(x, axis=-1, keepdims=True)
    xc = x - mu
    var = jnp.mean(xc * xc, axis=-1, keepdims=True)
    return xc * lax.rsqrt(var + eps) * g + b


# ----------------------------------------------------------------------------
# Kernel 1: LN1 + fused QKV projection.
# Grid (batch, row_tile, col_tile) with the column axis last ("arbitrary");
# the LayerNorm result is cached (bf16) in VMEM scratch at c == 0.
# ----------------------------------------------------------------------------
def _ln_qkv_kernel(x_ref, g_ref, b_ref, w_ref, wb_ref, o_ref, ln_ref, *, eps):
    @pl.when(pl.program_id(2) == 0)
    def _():
        ln_ref[...] = _layernorm(x_ref[...].astype(jnp.float32),
                                 g_ref[...], b_ref[...], eps).astype(ln_ref.dtype)

    y = jnp.dot(ln_ref[...], w_ref[...], preferred_element_type=jnp.float32) + wb_ref[...]
    o_ref[...] = y.astype(o_ref.dtype)


def pallas_ln_qkv(x, ln_g, ln_b, w, wb, *, eps, row_block, col_block):
    B, S_pad, D = x.shape
    N = w.shape[1]
    cb = _pick_block(N, col_block)
    grid = (B, S_pad // row_block, N // cb)
    return pl.pallas_call(
        partial(_ln_qkv_kernel, eps=eps),
        grid=grid,
        in_specs=[
            pl.BlockSpec((None, row_block, D), lambda b, r, c: (b, r, 0)),
            pl.BlockSpec((1, D), lambda b, r, c: (0, 0)),
            pl.BlockSpec((1, D), lambda b, r, c: (0, 0)),
            pl.BlockSpec((D, cb), lambda b, r, c: (0, c)),
            pl.BlockSpec((1, cb), lambda b, r, c: (0, c)),
        ],
        out_specs=pl.BlockSpec((None, row_block, cb), lambda b, r, c: (b, r, c)),
        out_shape=jax.ShapeDtypeStruct((B, S_pad, N), jnp.bfloat16),
        scratch_shapes=[pltpu.VMEM((row_block, D), jnp.bfloat16)],
        compiler_params=pltpu.CompilerParams(
            dimension_semantics=("parallel", "parallel", "arbitrary"),
            vmem_limit_bytes=VMEM_LIMIT),
    )(x, ln_g, ln_b, w, wb)


# ----------------------------------------------------------------------------
# Kernel 2: attention per (batch, head).  q/k/v are read straight out of the
# fused qkv activation via per-head column BlockSpecs (no wrapper transposes);
# rotary + QK^T (one K=head_dim dot) + softmax + P@V; bf16 MXU operands.
# ----------------------------------------------------------------------------
def _attention_kernel(q_ref, k_ref, v_ref, cos_ref, sin_ref, o_ref, *, seq_len, scale):
    q = q_ref[...].astype(jnp.float32)          # (S_pad, hd) de-interleaved layout
    k = k_ref[...].astype(jnp.float32)
    cos = cos_ref[...]                          # (S_pad, hd) = [cos | cos]
    sin = sin_ref[...]                          # (S_pad, hd) = [-sin | sin]
    hd = q.shape[-1]

    # rotary: per head layout is [x_0..x_{m-1} | y_0..y_{m-1}]; rolling by hd//2
    # swaps the halves, so the rotation is a single lane-dense VPU pass.
    q_rot = (q * cos + pltpu.roll(q, shift=hd // 2, axis=1) * sin).astype(jnp.bfloat16)
    k_rot = (k * cos + pltpu.roll(k, shift=hd // 2, axis=1) * sin).astype(jnp.bfloat16)

    # one dot over the full head_dim (invariant under the per-head permutation)
    scores = lax.dot_general(q_rot, k_rot, (((1,), (1,)), ((), ())),
                             preferred_element_type=jnp.float32) * scale

    # mask padded key columns
    key_idx = lax.broadcasted_iota(jnp.int32, scores.shape, 1)
    scores = jnp.where(key_idx < seq_len, scores, -1e30)

    m = jnp.max(scores, axis=-1, keepdims=True)
    p = jnp.exp(scores - m)
    denom = jnp.sum(p, axis=-1, keepdims=True)
    p = (p * pl.reciprocal(denom, approx=True)).astype(jnp.bfloat16)

    o_ref[...] = jnp.dot(p, v_ref[...],
                         preferred_element_type=jnp.float32).astype(o_ref.dtype)


def pallas_attention(qkv, cos_tab, sin_tab, *, num_heads, head_dim, seq_len):
    B, S_pad, _ = qkv.shape
    H, hd = num_heads, head_dim
    D = H * hd

    def head_spec(off):
        return pl.BlockSpec((None, S_pad, hd), lambda b, h, off=off: (b, 0, off + h))

    tab_spec = pl.BlockSpec((S_pad, hd), lambda b, h: (0, 0))
    return pl.pallas_call(
        partial(_attention_kernel, seq_len=seq_len, scale=1.0 / math.sqrt(hd)),
        grid=(B, H),
        in_specs=[head_spec(0), head_spec(H), head_spec(2 * H), tab_spec, tab_spec],
        out_specs=pl.BlockSpec((None, S_pad, hd), lambda b, h: (b, 0, h)),
        out_shape=jax.ShapeDtypeStruct((B, S_pad, D), jnp.bfloat16),
        compiler_params=pltpu.CompilerParams(
            dimension_semantics=("parallel", "parallel"),
            vmem_limit_bytes=VMEM_LIMIT),
    )(qkv, qkv, qkv, cos_tab, sin_tab)


# ----------------------------------------------------------------------------
# Kernel 3: o_proj + bias + residual (row-tiled, one (rows,D)@(D,D) matmul).
# ----------------------------------------------------------------------------
def _oproj_residual_kernel(x_ref, w_ref, b_ref, res_ref, o_ref):
    y = (jnp.dot(x_ref[...], w_ref[...], preferred_element_type=jnp.float32)
         + b_ref[...] + res_ref[...])
    o_ref[...] = y.astype(o_ref.dtype)


def pallas_oproj_residual(ctx, w, b, res, *, row_block):
    R, D = ctx.shape
    row_spec = pl.BlockSpec((row_block, D), lambda i: (i, 0))
    return pl.pallas_call(
        _oproj_residual_kernel,
        grid=(R // row_block,),
        in_specs=[row_spec,
                  pl.BlockSpec((D, D), lambda i: (0, 0)),
                  pl.BlockSpec((1, D), lambda i: (0, 0)),
                  row_spec],
        out_specs=row_spec,
        out_shape=jax.ShapeDtypeStruct((R, D), jnp.float32),
        compiler_params=pltpu.CompilerParams(
            dimension_semantics=("parallel",),
            vmem_limit_bytes=VMEM_LIMIT),
    )(ctx, w, b, res)


# ----------------------------------------------------------------------------
# Kernel 4: LN2 + MLP (exact GELU) + residual, K-tiled over the intermediate
# dim with a VMEM accumulator (reduction axis last, "arbitrary"); LN cached.
# ----------------------------------------------------------------------------
def _ln_mlp_kernel(x_ref, g_ref, b_ref, w1_ref, b1_ref, w2_ref, b2_ref, o_ref,
                   ln_ref, acc_ref, *, eps):
    j = pl.program_id(1)

    @pl.when(j == 0)
    def _():
        ln_ref[...] = _layernorm(x_ref[...], g_ref[...], b_ref[...],
                                 eps).astype(ln_ref.dtype)
        acc_ref[...] = jnp.zeros_like(acc_ref)

    h = jnp.dot(ln_ref[...], w1_ref[...], preferred_element_type=jnp.float32) + b1_ref[...]
    h = _gelu_exact(h).astype(jnp.bfloat16)
    acc_ref[...] += jnp.dot(h, w2_ref[...], preferred_element_type=jnp.float32)

    @pl.when(j == pl.num_programs(1) - 1)
    def _():
        o_ref[...] = (x_ref[...] + acc_ref[...] + b2_ref[...]).astype(o_ref.dtype)


def pallas_ln_mlp(x, ln_g, ln_b, w1, b1, w2, b2, *, eps, row_block, inter_block):
    R, D = x.shape
    I = w1.shape[1]
    ib = _pick_block(I, inter_block)
    grid = (R // row_block, I // ib)
    return pl.pallas_call(
        partial(_ln_mlp_kernel, eps=eps),
        grid=grid,
        in_specs=[
            pl.BlockSpec((row_block, D), lambda i, j: (i, 0)),
            pl.BlockSpec((1, D), lambda i, j: (0, 0)),
            pl.BlockSpec((1, D), lambda i, j: (0, 0)),
            pl.BlockSpec((D, ib), lambda i, j: (0, j)),
            pl.BlockSpec((1, ib), lambda i, j: (0, j)),
            pl.BlockSpec((ib, D), lambda i, j: (j, 0)),
            pl.BlockSpec((1, D), lambda i, j: (0, 0)),
        ],
        out_specs=pl.BlockSpec((row_block, D), lambda i, j: (i, 0)),
        out_shape=jax.ShapeDtypeStruct((R, D), jnp.float32),
        scratch_shapes=[pltpu.VMEM((row_block, D), jnp.bfloat16),
                        pltpu.VMEM((row_block, D), jnp.float32)],
        compiler_params=pltpu.CompilerParams(
            dimension_semantics=("parallel", "arbitrary"),
            vmem_limit_bytes=VMEM_LIMIT),
    )(x, ln_g, ln_b, w1, b1, w2, b2)


# ----------------------------------------------------------------------------
# Encoder forward (Pallas) — pure JAX glue is padding / reshape only.
# ----------------------------------------------------------------------------
def encoder_forward(hidden_states, freqs_cos, freqs_sin, kp, cfg):
    B, S, D = hidden_states.shape
    H, hd = cfg["num_heads"], cfg["head_dim"]
    eps = 1e-5  # the PyTorch module hardcodes eps=1e-05 for both LayerNorms

    # production defaults: row_block=256, qkv_col_block=1536, mlp_inter_block=512
    row_target = cfg.get("row_block", 256)
    qkv_col_block = cfg.get("qkv_col_block", 1536)
    mlp_inter_block = cfg.get("mlp_inter_block", 512)

    # Row tile: pad the sequence up to a multiple of rb so every row tile is
    # full-sized (weight panels are streamed once per row tile, not per 8 rows).
    rb = _round_up(min(row_target, _round_up(S, 8)), 8)
    S_pad = _round_up(S, rb)

    x = jnp.pad(hidden_states, ((0, 0), (0, S_pad - S), (0, 0)))   # f32 residual stream

    # lane-dense rotary tables for the de-interleaved per-head layout
    pad_rows = S_pad - S
    cos_p = jnp.pad(freqs_cos, ((0, pad_rows), (0, 0)), constant_values=1.0)
    sin_p = jnp.pad(freqs_sin, ((0, pad_rows), (0, 0)), constant_values=0.0)
    cos_tab = jnp.concatenate([cos_p, cos_p], axis=-1)             # (S_pad, hd)
    sin_tab = jnp.concatenate([-sin_p, sin_p], axis=-1)            # (S_pad, hd)

    R = B * S_pad
    for lp in kp["layers"]:
        qkv = pallas_ln_qkv(x, lp["ln1_g"], lp["ln1_b"], lp["qkv_w"], lp["qkv_b"],
                            eps=eps, row_block=rb, col_block=qkv_col_block)
        ctx = pallas_attention(qkv, cos_tab, sin_tab,
                               num_heads=H, head_dim=hd, seq_len=S)
        x2 = pallas_oproj_residual(ctx.reshape(R, D), lp["o_w"], lp["o_b"],
                                   x.reshape(R, D), row_block=rb)
        x = pallas_ln_mlp(x2, lp["ln2_g"], lp["ln2_b"], lp["fc1_w"], lp["fc1_b"],
                          lp["fc2_w"], lp["fc2_b"], eps=eps,
                          row_block=rb, inter_block=mlp_inter_block)
        x = x.reshape(B, S_pad, D)

    return x[:, :S, :]


# ----------------------------------------------------------------------------
# Pure-JAX reference (faithful to the PyTorch module, interleaved rotary, f32)
# ----------------------------------------------------------------------------
def _ln_ref(x, g, b, eps):
    mu = jnp.mean(x, axis=-1, keepdims=True)
    xc = x - mu
    var = jnp.mean(xc * xc, axis=-1, keepdims=True)
    return xc * lax.rsqrt(var + eps) * g + b


def reference_forward(hidden_states, freqs_cos, freqs_sin, tp, cfg):
    B, S, D = hidden_states.shape
    H, hd = cfg["num_heads"], cfg["head_dim"]
    x = hidden_states
    c = freqs_cos[None, :, None, :]
    s = freqs_sin[None, :, None, :]
    for lt in tp["layers"]:
        res = x
        h = _ln_ref(x, lt["ln1_g"], lt["ln1_b"], 1e-5)
        q = (h @ lt["Wq"].T + lt["bq"]).reshape(B, S, H, hd)
        k = (h @ lt["Wk"].T + lt["bk"]).reshape(B, S, H, hd)
        v = (h @ lt["Wv"].T + lt["bv"]).reshape(B, S, H, hd)
        qr = q.reshape(B, S, H, hd // 2, 2)
        kr = k.reshape(B, S, H, hd // 2, 2)
        xq, yq = qr[..., 0], qr[..., 1]
        xk, yk = kr[..., 0], kr[..., 1]
        q = jnp.stack([xq * c - yq * s, xq * s + yq * c], axis=-1).reshape(B, S, H, hd)
        k = jnp.stack([xk * c - yk * s, xk * s + yk * c], axis=-1).reshape(B, S, H, hd)
        qh, kh, vh = (t.transpose(0, 2, 1, 3) for t in (q, k, v))
        scores = jnp.einsum("bhqd,bhkd->bhqk", qh, kh) / math.sqrt(hd)
        attn = jax.nn.softmax(scores, axis=-1)
        out = jnp.einsum("bhqk,bhkd->bhqd", attn, vh).transpose(0, 2, 1, 3).reshape(B, S, D)
        x = res + (out @ lt["Wo"].T + lt["bo"])
        res = x
        h = _ln_ref(x, lt["ln2_g"], lt["ln2_b"], 1e-5)
        h = jax.nn.gelu(h @ lt["W1"].T + lt["b1"], approximate=False)
        h = h @ lt["W2"].T + lt["b2"]
        x = res + h
    return x


# ----------------------------------------------------------------------------
# Deterministic parameter init (torch layout) + kernel-layout conversion
# (transpose to x @ W form, de-interleave q/k head columns, cast weights bf16)
# ----------------------------------------------------------------------------
def init_params(key, cfg):
    D = cfg["hidden_size"]
    I = cfg["intermediate_size"]
    H, hd = cfg["num_heads"], cfg["head_dim"]

    keys = iter(jax.random.split(key, 256))
    nrm = lambda shape, sc: sc * jax.random.normal(next(keys), shape, jnp.float32)

    tp = {"layers": []}
    for _ in range(cfg["num_layers"]):
        tp["layers"].append({
            "ln1_g": 1.0 + nrm((D,), 0.1), "ln1_b": nrm((D,), 0.1),
            "Wq": nrm((D, D), 0.02), "bq": nrm((D,), 0.05),
            "Wk": nrm((D, D), 0.02), "bk": nrm((D,), 0.05),
            "Wv": nrm((D, D), 0.02), "bv": nrm((D,), 0.05),
            "Wo": nrm((D, D), 0.02), "bo": nrm((D,), 0.05),
            "ln2_g": 1.0 + nrm((D,), 0.1), "ln2_b": nrm((D,), 0.1),
            "W1": nrm((I, D), 0.02), "b1": nrm((I,), 0.05),
            "W2": nrm((D, I), 0.02), "b2": nrm((D,), 0.05),
        })

    # permute q/k head dims from interleaved (x0,y0,x1,y1,...) to [x...|y...]
    perm = jnp.concatenate([jnp.arange(0, hd, 2), jnp.arange(1, hd, 2)])
    full_perm = (jnp.arange(H)[:, None] * hd + perm[None, :]).reshape(-1)
    bf16 = lambda a: a.astype(jnp.bfloat16)

    kp = {"layers": []}
    for lt in tp["layers"]:
        WqT = lt["Wq"].T[:, full_perm]
        WkT = lt["Wk"].T[:, full_perm]
        kp["layers"].append({
            "ln1_g": lt["ln1_g"].reshape(1, D), "ln1_b": lt["ln1_b"].reshape(1, D),
            "qkv_w": bf16(jnp.concatenate([WqT, WkT, lt["Wv"].T], axis=1)),
            "qkv_b": jnp.concatenate(
                [lt["bq"][full_perm], lt["bk"][full_perm], lt["bv"]]).reshape(1, 3 * D),
            "o_w": bf16(lt["Wo"].T), "o_b": lt["bo"].reshape(1, D),
            "ln2_g": lt["ln2_g"].reshape(1, D), "ln2_b": lt["ln2_b"].reshape(1, D),
            "fc1_w": bf16(lt["W1"].T), "fc1_b": lt["b1"].reshape(1, I),
            "fc2_w": bf16(lt["W2"].T), "fc2_b": lt["b2"].reshape(1, D),
        })
    return tp, kp


if __name__ == "__main__":
    cfg = dict(
        hidden_size=256, num_heads=2, head_dim=128,
        intermediate_size=512, num_layers=2,
        # small tile targets so the toy run exercises row / column / K tiling;
        # production defaults would be row_block=256, qkv_col_block=1536,
        # mlp_inter_block=512.
        row_block=16, qkv_col_block=256, mlp_inter_block=256,
    )
    key = jax.random.PRNGKey(0)
    k_param, k_x, k_rope = jax.random.split(key, 3)

    B, S = 2, 17                      # S mimics (img/patch)^2 + 1 class token (not 8-aligned)
    D, hd = cfg["hidden_size"], cfg["head_dim"]

    torch_params, kernel_params = init_params(k_param, cfg)
    hidden_states = jax.random.normal(k_x, (B, S, D), jnp.float32)

    # freqs_ci equivalent: per-position rotary (cos, sin), each (S, head_dim // 2)
    theta = jax.random.uniform(k_rope, (S, hd // 2), jnp.float32, -math.pi, math.pi)
    freqs_cos, freqs_sin = jnp.cos(theta), jnp.sin(theta)

    out = encoder_forward(hidden_states, freqs_cos, freqs_sin, kernel_params, cfg)
    out = jax.block_until_ready(out)

    ref = reference_forward(hidden_states, freqs_cos, freqs_sin, torch_params, cfg)
    ref = jax.block_until_ready(ref)

    assert out.shape == ref.shape, (out.shape, ref.shape)
    max_err = float(jnp.max(jnp.abs(out - ref)))
    # bf16 weights/activations + default (bf16 MXU) precision => bf16-class tolerance
    assert jnp.allclose(out, ref, atol=2e-2, rtol=2e-2), f"max abs err {max_err}"
    print("KERNEL_OK")
</pallas_src>

<mosaic_0001>
module attributes {stable_mosaic.version = 11 : i64} {
  func.func @_ln_qkv_kernel(%arg0: i32, %arg1: i32, %arg2: i32, %arg3: memref<1x16x256xf32, #tpu.memory_space<vmem>>, %arg4: memref<1x256xf32, #tpu.memory_space<vmem>>, %arg5: memref<1x256xf32, #tpu.memory_space<vmem>>, %arg6: memref<256x256xbf16, #tpu.memory_space<vmem>>, %arg7: memref<1x256xf32, #tpu.memory_space<vmem>>, %arg8: memref<1x16x256xbf16, #tpu.memory_space<vmem>>, %arg9: memref<16x256xbf16, #tpu.memory_space<vmem>>) attributes {dimension_semantics = [#tpu.dimension_semantics<parallel>, #tpu.dimension_semantics<parallel>, #tpu.dimension_semantics<arbitrary>], iteration_bounds = array<i64: 2, 2, 3>, scalar_prefetch = 0 : i64, scratch_operands = 1 : i64, tpu.core_type = #tpu.core_type<tc>, window_params = [{transform_indices = @transform_0, window_bounds = array<i64: 1, 16, 256>}, {pipeline_mode = #tpu.pipeline_mode<synchronous>, transform_indices = @transform_1, window_bounds = array<i64: 1, 256>}, {pipeline_mode = #tpu.pipeline_mode<synchronous>, transform_indices = @transform_2, window_bounds = array<i64: 1, 256>}, {transform_indices = @transform_3, window_bounds = array<i64: 256, 256>}, {transform_indices = @transform_4, window_bounds = array<i64: 1, 256>}, {transform_indices = @transform_5, window_bounds = array<i64: 1, 16, 256>}]} {
    %c0_i32 = arith.constant 0 : i32
    %0 = arith.cmpi eq, %arg2, %c0_i32 : i32
    %1 = arith.extui %0 : i1 to i32
    %c0_i32_0 = arith.constant 0 : i32
    %2 = arith.cmpi ne, %1, %c0_i32_0 : i32
    scf.if %2 {
      %c0_9 = arith.constant 0 : index
      %c0_10 = arith.constant 0 : index
      %c0_11 = arith.constant 0 : index
      %13 = vector.load %arg3[%c0_9, %c0_10, %c0_11] : memref<1x16x256xf32, #tpu.memory_space<vmem>>, vector<1x16x256xf32>
      %14 = vector.shape_cast %13 : vector<1x16x256xf32> to vector<16x256xf32>
      %c0_12 = arith.constant 0 : index
      %c0_13 = arith.constant 0 : index
      %15 = vector.load %arg4[%c0_12, %c0_13] : memref<1x256xf32, #tpu.memory_space<vmem>>, vector<1x256xf32>
      %c0_14 = arith.constant 0 : index
      %c0_15 = arith.constant 0 : index
      %16 = vector.load %arg5[%c0_14, %c0_15] : memref<1x256xf32, #tpu.memory_space<vmem>>, vector<1x256xf32>
      %cst_16 = arith.constant dense<0.000000e+00> : vector<16xf32>
      %17 = vector.multi_reduction <add>, %14, %cst_16 [1] : vector<16x256xf32> to vector<16xf32>
      %18 = vector.shape_cast %17 : vector<16xf32> to vector<16x1xf32>
      %cst_17 = arith.constant 2.560000e+02 : f32
      %19 = vector.broadcast %cst_17 : f32 to vector<16x1xf32>
      %20 = arith.divf %18, %19 : vector<16x1xf32>
      %21 = vector.broadcast %20 : vector<16x1xf32> to vector<16x256xf32>
      %22 = arith.subf %14, %21 : vector<16x256xf32>
      %23 = arith.mulf %22, %22 : vector<16x256xf32>
      %cst_18 = arith.constant dense<0.000000e+00> : vector<16xf32>
      %24 = vector.multi_reduction <add>, %23, %cst_18 [1] : vector<16x256xf32> to vector<16xf32>
      %25 = vector.shape_cast %24 : vector<16xf32> to vector<16x1xf32>
      %cst_19 = arith.constant 2.560000e+02 : f32
      %26 = vector.broadcast %cst_19 : f32 to vector<16x1xf32>
      %27 = arith.divf %25, %26 : vector<16x1xf32>
      %cst_20 = arith.constant 9.99999974E-6 : f32
      %28 = vector.broadcast %cst_20 : f32 to vector<16x1xf32>
      %29 = arith.addf %27, %28 : vector<16x1xf32>
      %30 = math.rsqrt %29 : vector<16x1xf32>
      %31 = vector.broadcast %30 : vector<16x1xf32> to vector<16x256xf32>
      %32 = arith.mulf %22, %31 : vector<16x256xf32>
      %33 = vector.broadcast %15 : vector<1x256xf32> to vector<16x256xf32>
      %34 = arith.mulf %32, %33 : vector<16x256xf32>
      %35 = vector.broadcast %16 : vector<1x256xf32> to vector<16x256xf32>
      %36 = arith.addf %34, %35 : vector<16x256xf32>
      %37 = arith.truncf %36 : vector<16x256xf32> to vector<16x256xbf16>
      %c0_21 = arith.constant 0 : index
      %c0_22 = arith.constant 0 : index
      %38 = vector.load %arg9[%c0_21, %c0_22] : memref<16x256xbf16, #tpu.memory_space<vmem>>, vector<16x256xbf16>
      tpu.vector_store %arg9[%c0_21, %c0_22], %37 {strides = array<i32>} : memref<16x256xbf16, #tpu.memory_space<vmem>>, vector<16x256xbf16>,
    } else {
    }
    %c0 = arith.constant 0 : index
    %c0_1 = arith.constant 0 : index
    %3 = vector.load %arg9[%c0, %c0_1] : memref<16x256xbf16, #tpu.memory_space<vmem>>, vector<16x256xbf16>
    %c0_2 = arith.constant 0 : index
    %c0_3 = arith.constant 0 : index
    %4 = vector.load %arg6[%c0_2, %c0_3] : memref<256x256xbf16, #tpu.memory_space<vmem>>, vector<256x256xbf16>
    %cst = arith.constant dense<0.000000e+00> : vector<16x256xf32>
    %5 = tpu.matmul %3, %4, %cst {dimension_numbers = #tpu.dot_dimension_numbers<[1], [0], [0], [1], [0, 0, 1, 1], [], []>} : vector<16x256xbf16>, vector<256x256xbf16>, vector<16x256xf32> -> vector<16x256xf32>
    %c0_4 = arith.constant 0 : index
    %c0_5 = arith.constant 0 : index
    %6 = vector.load %arg7[%c0_4, %c0_5] : memref<1x256xf32, #tpu.memory_space<vmem>>, vector<1x256xf32>
    %7 = vector.broadcast %6 : vector<1x256xf32> to vector<16x256xf32>
    %8 = arith.addf %5, %7 : vector<16x256xf32>
    %9 = arith.truncf %8 : vector<16x256xf32> to vector<16x256xbf16>
    %c0_6 = arith.constant 0 : index
    %c0_7 = arith.constant 0 : index
    %c0_8 = arith.constant 0 : index
    %10 = vector.load %arg8[%c0_6, %c0_7, %c0_8] : memref<1x16x256xbf16, #tpu.memory_space<vmem>>, vector<1x16x256xbf16>
    %11 = vector.shape_cast %10 : vector<1x16x256xbf16> to vector<16x256xbf16>
    %12 = vector.shape_cast %9 : vector<16x256xbf16> to vector<1x16x256xbf16>
    tpu.vector_store %arg8[%c0_6, %c0_7, %c0_8], %12 {strides = array<i32>} : memref<1x16x256xbf16, #tpu.memory_space<vmem>>, vector<1x16x256xbf16>,
    return
  }
  func.func @transform_0(%arg0: i32, %arg1: i32, %arg2: i32) -> (i32, i32, i32) {
    %c0_i32 = arith.constant 0 : i32
    %c0_i32_0 = arith.constant 0 : i32
    return %arg0, %arg1, %c0_i32 : i32, i32, i32
  }
  func.func @transform_1(%arg0: i32, %arg1: i32, %arg2: i32) -> (i32, i32) {
    %c0_i32 = arith.constant 0 : i32
    %c0_i32_0 = arith.constant 0 : i32
    %c0_i32_1 = arith.constant 0 : i32
    return %c0_i32, %c0_i32_0 : i32, i32
  }
  func.func @transform_2(%arg0: i32, %arg1: i32, %arg2: i32) -> (i32, i32) {
    %c0_i32 = arith.constant 0 : i32
    %c0_i32_0 = arith.constant 0 : i32
    %c0_i32_1 = arith.constant 0 : i32
    return %c0_i32, %c0_i32_0 : i32, i32
  }
  func.func @transform_3(%arg0: i32, %arg1: i32, %arg2: i32) -> (i32, i32) {
    %c0_i32 = arith.constant 0 : i32
    %c0_i32_0 = arith.constant 0 : i32
    return %c0_i32, %arg2 : i32, i32
  }
  func.func @transform_4(%arg0: i32, %arg1: i32, %arg2: i32) -> (i32, i32) {
    %c0_i32 = arith.constant 0 : i32
    %c0_i32_0 = arith.constant 0 : i32
    return %c0_i32, %arg2 : i32, i32
  }
  func.func @transform_5(%arg0: i32, %arg1: i32, %arg2: i32) -> (i32, i32, i32) {
    %c0_i32 = arith.constant 0 : i32
    return %arg0, %arg1, %arg2 : i32, i32, i32
  }
}

</mosaic_0001>

<bundles_post_ra>
// kernel: tpu_custom_call.1
= control target key start
LH: loop header
LB: loop body
LE: loop exit
PB: predicated region body
PF: predicated region fallthrough
CT: control target
= control target key end

     0   :  { %s1915_s0 = inlined_call_operand.hbm [shape: f32[2,32,256], index: 0, kind: input, shape index: {}]   ;;  %s1916_s1 = inlined_call_operand.hbm [shape: f32[1,256], index: 1, kind: input, shape index: {}]   ;;  %s1917_s2 = inlined_call_operand.hbm [shape: f32[1,256], index: 2, kind: input, shape index: {}]   ;;  %s1918_s3 = inlined_call_operand.hbm [shape: bf16[256,768], index: 3, kind: input, shape index: {}]   ;;  %s1919_s4 = inlined_call_operand.vmem [shape: f32[1,768], index: 4, kind: input, shape index: {}]   ;;  %s1920_s5 = inlined_call_operand.hbm [shape: bf16[2,32,768], index: 5, kind: output, shape index: {}]  }
   0x1   :  { %1937 = sst [smem:[#allocation26_spill]] %s1915_s0 }
   0x2   :  { %1938 = sst [smem:[#allocation27_spill]] %s1916_s1 }
   0x3   :  { %1939 = sst [smem:[#allocation28_spill]] %s1917_s2 }
   0x4   :  { %1940 = sst [smem:[#allocation29_spill]] %s1918_s3 }
   0x5   :  { %1941 = sst [smem:[#allocation30_spill]] %s1919_s4 }
   0x6   :  { %1942 = sst [smem:[#allocation31_spill]] %s1920_s5 }
   0x7   :  { %10 = vsyncpa [#allocation4], 0 }
   0x8   :  { %12 = vsyncpa [#allocation4 + $0x1], 0 }
   0x9   :  { %13 = vsyncpa [#allocation7], 0 }
   0xa   :  { %14 = vsyncpa [#allocation10], 0 }
   0xb   :  { %16 = vsyncpa [#allocation10 + $0x1], 0 }
   0xc   :  { %17 = vsyncpa [#allocation5], 0 }
   0xd   :  { %19 = vsyncpa [#allocation5 + $0x1], 0  ;;  %s1514_s18 = smov 0   ;;  %s1516_s19 = smov 0  }
   0xe   :  { %s1518_s20 = smov 0   ;;  %s1520_s21 = smov 0  }
   0xf   :  { %s1522_s22 = smov 0   ;;  %s1524_s23 = smov 0  }
  0x10   :  { %s1526_s24 = smov 0   ;;  %s1528_s25 = smov 0  }
  0x11   :  { %s1530_s26 = smov 0   ;;  %s1532_s27 = smov 0  }
  0x12   :  { %s1534_s28 = smov 0   ;;  %s1536_s29 = smov 0  }
  0x13   :  { %s1538_s30 = smov 0   ;;  %s1540_s6 = smov 0  }
  0x14   :  { %s1542_s7 = smov 0   ;;  %s1544_s8 = smov 0  }
  0x15 LB: > { %1943 = sst [smem:[#allocation16_spill]] %s1409_s18  ;;  %s887_s9 = sadd.s32 4294967295, %s1469_s8   ;;  %s1469_s8 = sphi %s1544_s8, %s25_s8   ;;  %s1465_s7 = sphi %s1542_s7, %s2005_s7   ;;  %s1461_s6 = sphi %s1540_s6, %s2004_s6   ;;  %s1457_s30 = sphi %s1538_s30, %s2003_s30   ;;  %s1453_s29 = sphi %s1536_s29, %s1987_s29   ;;  %s1449_s28 = sphi %s1534_s28, %s2002_s28   ;;  %s1445_s27 = sphi %s1532_s27, %s2001_s27   ;;  %s1441_s26 = sphi %s1530_s26, %s2000_s26   ;;  %s1437_s25 = sphi %s1528_s25, %s1999_s25   ;;  %s1433_s24 = sphi %s1526_s24, %s1998_s24   ;;  %s1429_s23 = sphi %s1524_s23, %s1997_s23   ;;  %s1425_s22 = sphi %s1522_s22, %s1996_s22   ;;  %s1421_s21 = sphi %s1520_s21, %s1995_s21   ;;  %s1417_s20 = sphi %s1518_s20, %s1994_s20   ;;  %s1413_s19 = sphi %s1516_s19, %s1993_s19   ;;  %s1409_s18 = sphi %s1514_s18, %s1991_s18  }
  0x16   : > { %1944 = sst [smem:[#allocation17_spill]] %s1445_s27  ;;  %s888_s10 = sadd.s32 4294967294, %s1469_s8  }
  0x17   : > { %1945 = sst [smem:[#allocation18_spill]] %s1449_s28  ;;  %p66_p0 = scmp.ne.s32.totalorder %s1437_s25, %s1433_s24 }
  0x18   : > { %1946 = sst [smem:[#allocation19_spill]] %s1453_s29  ;;  %p1593_p1 = scmp.eq.s32.totalorder %s887_s9, 0 }
  0x19   : > { %1947 = sst [smem:[#allocation20_spill]] %s1465_s7  ;;  %p134_p2 = scmp.ne.s32.totalorder %s1425_s22, %s1421_s21 }
  0x1a   : > { %s1948_s11 = scalar_select %p1593_p1, 1, 0 }
  0x1b   : > { %p1601_p3 = por %p1593_p1, %p66_p0  ;;  %p187_p4 = scmp.ne.s32.totalorder %s1417_s20, %s1413_s19 }
  0x1c   : > { %p1609_p5 = por %p134_p2, %p1593_p1  ;;  %p188_p6 = scmp.eq.s32.totalorder %s887_s9, 11 }
  0x1d   : > { %s1949_s13 = scalar_select %p1601_p3, 1, 0 }
  0x1e   : > { %s1950_s14 = scalar_select %p1609_p5, 1, 0 }
  0x1f   : > { %p193_p7 = scmp.ne.s32.totalorder %s1413_s19, %s1409_s18  ;;  %p194_p8 = scmp.eq.s32.totalorder %s888_s10, 11 }
  0x20   : > { %p1615_p9 = por %p188_p6, %p187_p4  ;;  %p889_p10 = scmp.ge.s32.totalorder %s1469_s8, 1 }
  0x21   : > { %p1620_p11 = por %p194_p8, %p193_p7  ;;  %p201_p12 = scmp.lt.s32.totalorder %s1469_s8, 13 }
  0x22   : > { %s1951_s15 = scalar_select %p1615_p9, 1, 0 }
  0x23   : > { %s1953_s16 = scalar_select %p1620_p11, 1, 0 }
  0x24   : > { %1952 = sst [smem:[#allocation21_spill]] %s1951_s15  ;;  %p1625_p13 = pnand %p889_p10, %p201_p12 }
  0x25   : > { %1954 = sst [smem:[#allocation22_spill]] %s1953_s16  ;;  %s1471_s21 = smov [#allocation6]  }
  0x26   : > { %s1955_s17 = scalar_select %p1625_p13, 1, 0 }
  0x27   : > { %s214_s24 = sshll.u32 %s1471_s21, 4  ;;  %p976_p0 = pneg %p1625_p13  ;;  %s215_s24 = int_to_ptr.vmem [resolvable:$true] %s214_s24 }
  0x28   : > { %s1472_s9 = smov [#allocation8]   ;;  %s1204_s16 = scalar_lea.vmem %s215_s24, 32 }
  0x29   : > { %s225_s10 = sshll.u32 %s1472_s9, 4  ;;  %p1633_p2 = pnand %p976_p0, %p1593_p1  ;;  %s226_s10 = int_to_ptr.vmem [resolvable:$true] %s225_s10 }
  0x2a   : > { %p1205_p6 = scmp.ne.s32.totalorder %s215_s24, %s1204_s16  ;;  %p1212_p10 = scmp.lt.s32.totalorder %s215_s24, %s215_s24 }
  0x2b   : > { %p1195_p4 = pneg %p1633_p2  ;;  %p1213_p12 = scmp.lt.s32.totalorder %s1204_s16, %s1204_s16 }
  0x2d   : > { %p1207_p7 = pnand %p1205_p6, %p1195_p4  ;;  %p1214_p11 = por %p1213_p12, %p1212_p10 }
  0x2f   : > { %p1208_p8 = pneg %p1207_p7 }
  0x31   : > { %p1215_p9 = pnand %p1214_p11, %p1208_p8 }
  0x33   : > { %1218 = shalt.err (!%p1215_p9)
}
  0x34   : > { %s1957_s1 = sld [smem:[#allocation27_spill]]  ;;  %s1230_s18 = scalar_lea.vmem %s226_s10, 32 }
  0x35   : > { %p1231_p0 = scmp.ne.s32.totalorder %s226_s10, %s1230_s18  ;;  %p1238_p6 = scmp.lt.s32.totalorder %s226_s10, %s226_s10 }
  0x36   : > { %p1239_p7 = scmp.lt.s32.totalorder %s1230_s18, %s1230_s18 }
  0x37   : > { %p1233_p5 = pnand %p1231_p0, %p1195_p4 }
  0x38   : > { %p1240_p3 = por %p1239_p7, %p1238_p6 }
  0x39   : > { %p1234_p1 = pneg %p1233_p5 }
  0x3a   : > { %979 = dma.hbm_to_vmem [thread:$0]  (!%p1633_p2), %s1957_s1, 32, %s215_s24, [#allocation7]  }
  0x3b   : > { %p1241_p13 = pnand %p1240_p3, %p1234_p1 }
  0x3d   : > { %1244 = shalt.err (!%p1241_p13)
}
  0x3e   : > { %s1958_s2 = sld [smem:[#allocation28_spill]]  ;;  %p60_p1 = scmp.ne.s32.totalorder %s1441_s26, %s1437_s25 }
  0x3f   : > { %p61_p3 = scmp.eq.s32.totalorder %s1469_s8, 0  ;;  %p996_p5 = scmp.lt.s32.totalorder %s1469_s8, 12 }
  0x40   : > { %s236_s5 = sand.u32 1, %s1441_s26   ;;  %s954_s12 = sshll.u32 %s1461_s6, 2 }
  0x41   : > { %p62_p9 = por %p61_p3, %p60_p1  ;;  %s893_s9 = sshll.u32 %s236_s5, 5 }
  0x42   : > { %s896_s16 = sshll.u32 %s1465_s7, 3  ;;  %s240_s29 = scalar_lea.vmem [#allocation3], %s893_s9 }
  0x43   : > { %s247_s1 = sadd.s32 %s954_s12, %s896_s16  ;;  %s250_s28 = sshll.u32 %s240_s29, 4  ;;  %s251_s28 = int_to_ptr.vmem [resolvable:$true] %s250_s28 }
  0x44   : > { %982 = dma.hbm_to_vmem [thread:$0]  (!%p1633_p2), %s1958_s2, 32, %s226_s10, [#allocation7]  }
  0x45   : > { %s897_s15 = sshll.u32 %s247_s1, 7  ;;  %s1959_s0 = sld [smem:[#allocation26_spill]] }
  0x46   : > { %p1672_p11 = pnand %p996_p5, %p62_p9  ;;  %s237_s24 = scalar_lea.sflag [#allocation4], %s236_s5 }
  0x47   : > { %s1258_s18 = scalar_lea.vmem %s251_s28, 512  ;;  %s1473_s1 = smov [#allocation3]  }
  0x48   : > { %p1247_p13 = pneg %p1672_p11  ;;  %p1259_p2 = scmp.ne.s32.totalorder %s251_s28, %s1258_s18 }
  0x49   : > { %s1263_s29 = sshll.u32 %s1473_s1, 4  ;;  %s1264_s29 = int_to_ptr.vmem [resolvable:$false] %s1263_s29 }
  0x4a   : > { %p1261_p4 = pnand %p1259_p2, %p1247_p13  ;;  %s1265_s12 = scalar_lea.vmem %s1264_s29, 1024 }
  0x4b   : > { %s249_s10 = scalar_lea.hbm %s1959_s0, %s897_s15  ;;  %p1266_p10 = scmp.lt.s32.totalorder %s251_s28, %s1264_s29 }
  0x4c   : > { %p1262_p8 = pneg %p1261_p4  ;;  %p1267_p12 = scmp.lt.s32.totalorder %s1265_s12, %s1258_s18 }
  0x4e   : > { %p1268_p0 = por %p1267_p12, %p1266_p10 }
  0x50   : > { %p1269_p6 = pnand %p1268_p0, %p1262_p8 }
  0x52   : > { %1272 = shalt.err (!%p1269_p6)
}
  0x53   : > { %s1474_s4 = smov 256   ;;  %s1475_s27 = smov 16  }
  0x54   : > { %986 = dma.hbm_to_vmem [thread:$0]  (!%p1672_p11), %s249_s10, 512, %s251_s28, %s237_s24, %s1474_s4, %s1474_s4, %s1475_s27  }
  0x55   : > { %s37_s15 = sadd.s32 1, %s1457_s30  ;;  %s121_s18 = sadd.s32 1, %s1429_s23 }
  0x56   : > { %p38_p7 = scmp.ge.s32.totalorder %s37_s15, 3  ;;  %p128_p1 = scmp.ne.s32.totalorder %s1429_s23, %s1425_s22 }
  0x57   : > { %s260_s5 = sand.u32 1, %s1429_s23   ;;  %s955_s9 = sshll.u32 %s1457_s30, 7 }
  0x58   : > { %s2007_s15 = smov (%p38_p7, %s37_s15), 0  ;;  %s1962_s16 = sadd.s32 1, %s1461_s6 }
  0x59   : > { %1961 = sst [smem:[#allocation23_spill]] %s2007_s15  ;;  %s2009_s16 = smov (!%p38_p7, %s1962_s16), %s1461_s6 }
  0x5a   : > { %s118_s1 = ssub.s32 %s1457_s30, %s2007_s15  ;;  %p1695_p9 = por %p128_p1, %p61_p3 }
  0x5b   : > { %p42_p11 = scmp.ge.s32.totalorder %s2009_s16, 2  ;;  %p119_p13 = scmp.eq.s32.totalorder %s118_s1, 0 }
  0x5c   : > { %s898_s28 = sshll.u32 %s260_s5, 8  ;;  %s1965_s24 = sadd.s32 1, %s1465_s7 }
  0x5d   : > { %s2011_s16 = smov (%p42_p11, %s2009_s16), 0  ;;  %s2013_s24 = smov (!%p42_p11, %s1965_s24), %s1465_s7 }
  0x5e   : > { %1964 = sst [smem:[#allocation24_spill]] %s2011_s16  ;;  %s49_s10 = ssub.s32 %s1461_s6, %s2011_s16 }
  0x5f   : > { %p46_p2 = scmp.ge.s32.totalorder %s2013_s24, 2  ;;  %s1966_s3 = sld [smem:[#allocation29_spill]] }
  0x60   : > { %s1712_s27 = scalar_select %p119_p13, %s1429_s23, %s121_s18  }
  0x61   : > { %s2015_s24 = smov (%p46_p2, %s2013_s24), 0  ;;  %s264_s0 = scalar_lea.vmem [#allocation9], %s898_s28 }
  0x62   : > { %1967 = sst [smem:[#allocation25_spill]] %s2015_s24  ;;  %s271_s2 = sshll.u32 %s264_s0, 4  ;;  %s1726_s2 = int_to_ptr.vmem [resolvable:$true] %s271_s2 }
  0x63   : > { %p1720_p3 = pnand %p996_p5, %p1695_p9  ;;  %s48_s16 = ssub.s32 %s1465_s7, %s2015_s24 }
  0x64   : > { %s1969_s29 = sadd.s32 1, %s1441_s26  ;;  %s1970_s0 = sadd.s32 1, %s1417_s20 }
  0x65   : > { %s1709_s4 = scalar_lea.hbm %s1966_s3, %s955_s9  ;;  %s50_s9 = sor.u32 %s49_s10, %s48_s16 }
  0x66   : > { %p51_p4 = scmp.eq.s32.totalorder %s50_s9, 0  ;;  %s174_s18 = sor.u32 %s118_s1, %s50_s9 }
  0x67   : > { %p175_p8 = scmp.eq.s32.totalorder %s174_s18, 0  ;;  %s261_s12 = scalar_lea.sflag [#allocation10], %s260_s5 }
  0x68   : > { %s1731_s28 = scalar_select %p51_p4, %s1441_s26, %s1969_s29  }
  0x69   : > { %s1736_s21 = scalar_select %p175_p8, %s1417_s20, %s1970_s0  }
  0x6a   : > { %p1275_p5 = pneg %p1720_p3  ;;  %s1286_s3 = scalar_lea.vmem %s1726_s2, 4096 }
  0x6b   : > { %p1287_p10 = scmp.ne.s32.totalorder %s1726_s2, %s1286_s3  ;;  %s1476_s24 = smov [#allocation9]  }
  0x6c   : > { %s1291_s7 = sshll.u32 %s1476_s24, 4  ;;  %s1292_s7 = int_to_ptr.vmem [resolvable:$false] %s1291_s7 }
  0x6d   : > { %p1289_p12 = pnand %p1287_p10, %p1275_p5  ;;  %s1293_s16 = scalar_lea.vmem %s1292_s7, 8192 }
  0x6e   : > { %p1294_p6 = scmp.lt.s32.totalorder %s1726_s2, %s1292_s7  ;;  %p1295_p7 = scmp.lt.s32.totalorder %s1293_s16, %s1286_s3 }
  0x6f   : > { %p1290_p0 = pneg %p1289_p12 }
  0x70   : > { %p1296_p1 = por %p1295_p7, %p1294_p6 }
  0x72   : > { %p1297_p9 = pnand %p1296_p1, %p1290_p0 }
  0x74   : > { %1300 = shalt.err (!%p1297_p9)
}
  0x75   : > { %s1477_s1 = smov 384   ;;  %s1478_s5 = smov 128  }
  0x76   : > { %s1479_s10 = smov 8   ;;  %p1971_p11 = scmp.ne.s32.totalorder %s1955_s17, 0 }
  0x77   : > { %989 = dma.hbm_to_vmem [thread:$0]  (!%p1720_p3), %s1709_s4, 4096, %s1726_s2, %s261_s12, %s1477_s1, %s1478_s5, %s1479_s10  }
  0x78   : > { %291 = sbr.rel (%p1971_p11) target bundleno = 747 (0x2eb), region = 40  ;;  %s293_s24 = sand.u32 (!%p1971_p11), 1, %s1437_s25  }
  0x79   : > { %s902_s9 = sshll.u32 (!%p1971_p11), %s293_s24, 5  ;;  %s294_s7 = scalar_lea.sflag (!%p1971_p11), [#allocation4], %s293_s24 }
  0x7a   : > { %s297_s3 = scalar_lea.vmem (!%p1971_p11), [#allocation3], %s902_s9  ;;  %p1972_p13 = scmp.ne.s32.totalorder (!%p1971_p11), %s1949_s13, 0 }
  0x7d   : > { %1392 = dma.done.wait (%p1972_p13), %s294_s7, 512  }
  0x7e   : > { %1394 = vsyncadd (%p1972_p13), %s294_s7, 4294966784  ;;  %p1973_p2 = scmp.ne.s32.totalorder %s1948_s11, 0 }
  0x80   : > { %1396 = dma.done.wait (%p1973_p2), [#allocation7], 64  }
  0x81   : > { %1398 = vsyncadd (%p1973_p2), [#allocation7], 4294967232  ;;  %s310_s2 = sand.u32 1, %s1425_s22   ;;  %p1974_p3 = scmp.ne.s32.totalorder %s1950_s14, 0 }
  0x82   : > { %s905_s17 = sshll.u32 %s310_s2, 8  ;;  %s311_s15 = scalar_lea.sflag [#allocation10], %s310_s2 }
  0x83   : > { %s1759_s4 = scalar_lea.vmem [#allocation9], %s905_s17 }
  0x84   : > { %1400 = dma.done.wait (%p1974_p3), %s311_s15, 4096  }
  0x85   : > { %1402 = vsyncadd (%p1974_p3), %s311_s15, 4294963200  ;;  %s1975_s13 = sld [smem:[#allocation17_spill]]  ;;  %s347_s18 = sand.u32 1, %s1413_s19  }
  0x86   : > { %s906_s11 = sshll.u32 %s347_s18, 4  ;;  %s1976_s1 = sld [smem:[#allocation30_spill]] }
  0x87   : > { %s1779_s14 = scalar_lea.vmem [#allocation11], %s906_s11 }
  0x8b   : > { %s1767_s29 = sshll.u32 %s1975_s13, 1  ;;  %p908_p8 = scmp.ne.s32.totalorder %s1975_s13, 0 }
  0x8c   : > { %p353_p4 = scmp.lt.s32.totalorder %s1767_s29, 5 }
  0x8d   : > { %362 = sbr.rel (%p908_p8) target bundleno = 464 (0x1d0), region = 60 }
  0x8e   : > { %s1773_s0 = scalar_select %p353_p4, %s1767_s29, 5 }
  0x90   : > { %s355_s5 = scalar_lea.vmem %s1976_s1, %s1773_s0 }
  0x92   : > { %v363_v0 = vld [vmem:[%s297_s3] sm:$0xff]  ;;  %v364_v1 = vld [vmem:[%s297_s3 + $0x8] sm:$0xff]  ;;  %v365_v2 = vld [vmem:[%s297_s3 + $0x10] sm:$0xff]  ;;  %v403_v24 = vlaneseq }
  0x93   : > { %v369_v3 = vadd.f32 %v364_v1, %v363_v0  ;;  %v366_v4 = vld [vmem:[%s297_s3 + $0x18] sm:$0xff]  ;;  %v367_v30 = vld [vmem:[#allocation6] sm:$0x3]  ;;  %v368_v31 = vld [vmem:[#allocation8] sm:$0x3] }
  0x94   : > { %v372_v5 = vadd.f32 %v366_v4, %v365_v2  ;;  %v404_v27 = vshrl.u32 %v403_v24, 7 }
  0x95   : > { %370 = vadd.xlane.f32.xlu0 %v369_v3 }
  0x96   : > { %v405_v28 = vsub.s32 0, %v404_v27  ;;  %v409_v29 = vsub.s32 1, %v404_v27 }
  0x98   : > { %v406_v32 = vrot.slane %v367_v30, %v405_v28  ;;  %v410_v33 = vrot.slane %v367_v30, %v409_v29  ;;  %v421_v35 = vrot.slane %v368_v31, %v405_v28  ;;  %v425_v36 = vrot.slane %v368_v31, %v409_v29 }
  0x99   : > { %373 = vadd.xlane.f32.xlu0 %v372_v5 }
 0x11e   : > { %v371_v6 = vpop.xlane.xlu0 %370 }
 0x11f   : > { %v376_v7 = vmul.f32 0.00390625, %v371_v6 }
 0x121   : > { %v378_v8 = vsub.f32 %v363_v0, %v376_v7  ;;  %v379_v9 = vsub.f32 %v364_v1, %v376_v7 }
 0x122   : > { %v374_v10 = vpop.xlane.xlu0 %373 }
 0x123   : > { %v377_v11 = vmul.f32 0.00390625, %v374_v10  ;;  %v382_v12 = vmul.f32 %v378_v8, %v378_v8  ;;  %v383_v13 = vmul.f32 %v379_v9, %v379_v9 }
 0x125   : > { %v380_v14 = vsub.f32 %v365_v2, %v377_v11  ;;  %v381_v15 = vsub.f32 %v366_v4, %v377_v11  ;;  %v386_v16 = vadd.f32 %v383_v13, %v382_v12 }
 0x127   : > { %387 = vadd.xlane.f32.xlu1 %v386_v16  ;;  %v384_v17 = vmul.f32 %v380_v14, %v380_v14  ;;  %v385_v18 = vmul.f32 %v381_v15, %v381_v15 }
 0x129   : > { %v389_v19 = vadd.f32 %v385_v18, %v384_v17 }
 0x12b   : > { %390 = vadd.xlane.f32.xlu1 %v389_v19 }
 0x1b0   : > { %v388_v20 = vpop.xlane.xlu1 %387 }
 0x1b1   : > { %v392_v21 = vmul.f32 0.00390625, %v388_v20 }
 0x1b3   : > { %v394_v22 = vadd.f32 1e-05, %v392_v21 }
 0x1b4   : > { %v391_v23 = vpop.xlane.xlu1 %390 }
 0x1b5   : > { %1138 = vrsqrt.f32 %v394_v22  ;;  %v393_v25 = vmul.f32 0.00390625, %v391_v23 }
 0x1b7   : > { %v395_v26 = vadd.f32 1e-05, %v393_v25 }
 0x1b9   : > { %1140 = vrsqrt.f32 %v395_v26 }
 0x1c2   : > { %v1139_v34 = vpop.eup %1138 }
 0x1c3   : > { %v398_v37 = vmul.f32 %v1139_v34, %v378_v8  ;;  %v399_v38 = vmul.f32 %v1139_v34, %v379_v9 }
 0x1c5   : > { %v413_v39 = vmul.f32 %v406_v32, %v398_v37  ;;  %v414_v40 = vmul.f32 %v410_v33, %v399_v38 }
 0x1c6   : > { %v1141_v41 = vpop.eup %1140 }
 0x1c7   : > { %v428_v42 = vadd.f32 %v421_v35, %v413_v39  ;;  %v429_v43 = vadd.f32 %v425_v36, %v414_v40  ;;  %v400_v44 = vmul.f32 %v1141_v41, %v380_v14  ;;  %v401_v45 = vmul.f32 %v1141_v41, %v381_v15 }
 0x1c9   : > { %v956_v46 = vpack.c.bf16 %v429_v43, %v428_v42  ;;  %v415_v47 = vmul.f32 %v406_v32, %v400_v44  ;;  %v416_v48 = vmul.f32 %v410_v33, %v401_v45 }
 0x1cb   : > { %444 = vst [vmem:[#allocation2] sm:$0xff] %v956_v46  ;;  %v430_v49 = vadd.f32 %v421_v35, %v415_v47  ;;  %v431_v50 = vadd.f32 %v425_v36, %v416_v48 }
 0x1cd   : > { %v957_v51 = vpack.c.bf16 %v431_v50, %v430_v49 }
 0x1cf   : > { %445 = vst [vmem:[#allocation2 + $0x8] sm:$0xff] %v957_v51 }
 0x1d0 PF: > { %v1142_v52 = vld [vmem:[%s1759_s4 + $0x74] ss:$8 sps:$4 sm:$0xff]   ;;  %v1144_v53 = vld [vmem:[%s1759_s4 + $0x70] ss:$8 sps:$4 sm:$0xff]   ;;  %v1145_v54 = vld [vmem:[%s1759_s4 + $0x64] ss:$8 sps:$4 sm:$0xff]   ;;  %v482_v22 = vlaneseq }
 0x1d1   : > { %662 = vmatprep.subr.bf16.mxu0 %v1142_v52  ;;  %v1147_v55 = vld [vmem:[%s1759_s4 + $0x60] ss:$8 sps:$4 sm:$0xff]   ;;  %v1148_v56 = vld [vmem:[%s1759_s4 + $0x54] ss:$8 sps:$4 sm:$0xff]   ;;  %v1150_v57 = vld [vmem:[%s1759_s4 + $0x50] ss:$8 sps:$4 sm:$0xff]  }
 0x1d2   : > { %663 = vmatpush1.bf16.msra.mxu0 %v1144_v53  ;;  %v1151_v58 = vld [vmem:[%s1759_s4 + $0x44] ss:$8 sps:$4 sm:$0xff]   ;;  %v1153_v59 = vld [vmem:[%s1759_s4 + $0x40] ss:$8 sps:$4 sm:$0xff]   ;;  %v1154_v60 = vld [vmem:[%s1759_s4 + $0x34] ss:$8 sps:$4 sm:$0xff]  }
 0x1d3   : > { %664 = vmatprep.subr.bf16.mxu0 %v1145_v54  ;;  %v1156_v61 = vld [vmem:[%s1759_s4 + $0x30] ss:$8 sps:$4 sm:$0xff]   ;;  %v1157_v62 = vld [vmem:[%s1759_s4 + $0x24] ss:$8 sps:$4 sm:$0xff]   ;;  %v1159_v63 = vld [vmem:[%s1759_s4 + $0x20] ss:$8 sps:$4 sm:$0xff]  }
 0x1d4   : > { %v1160_v0 = vld [vmem:[%s1759_s4 + $0x14] ss:$8 sps:$4 sm:$0xff]   ;;  %v1162_v2 = vld [vmem:[%s1759_s4 + $0x10] ss:$8 sps:$4 sm:$0xff]   ;;  %v1163_v3 = vld [vmem:[%s1759_s4 + $0x4] ss:$8 sps:$4 sm:$0xff]  }
 0x1d5   : > { %v1165_v4 = vld [vmem:[%s1759_s4] ss:$8 sps:$4 sm:$0xff]   ;;  %v1166_v5 = vld [vmem:[%s1759_s4 + $0xf4] ss:$8 sps:$4 sm:$0xff]   ;;  %v1168_v6 = vld [vmem:[%s1759_s4 + $0xf0] ss:$8 sps:$4 sm:$0xff]  }
 0x1d6   : > { %665 = vmatpush1.bf16.msra.mxu0 %v1147_v55  ;;  %v1192_v1 = vld [vmem:[#allocation2 + $0x4] ss:$8 sps:$4 sm:$0xff]   ;;  %v1169_v7 = vld [vmem:[%s1759_s4 + $0xe4] ss:$8 sps:$4 sm:$0xff]   ;;  %v1171_v8 = vld [vmem:[%s1759_s4 + $0xe0] ss:$8 sps:$4 sm:$0xff]  }
 0x1d7   : > { %666 = vmatprep.subr.bf16.mxu0 %v1148_v56  ;;  %694 = vmatprep.mubr.bf16.mxu0 %v1192_v1  ;;  %v1172_v9 = vld [vmem:[%s1759_s4 + $0xd4] ss:$8 sps:$4 sm:$0xff]   ;;  %v1174_v10 = vld [vmem:[%s1759_s4 + $0xd0] ss:$8 sps:$4 sm:$0xff]   ;;  %v1175_v11 = vld [vmem:[%s1759_s4 + $0xc4] ss:$8 sps:$4 sm:$0xff]  }
 0x1d8   : > { %v1177_v12 = vld [vmem:[%s1759_s4 + $0xc0] ss:$8 sps:$4 sm:$0xff]   ;;  %v1178_v13 = vld [vmem:[%s1759_s4 + $0xb4] ss:$8 sps:$4 sm:$0xff]   ;;  %v1180_v14 = vld [vmem:[%s1759_s4 + $0xb0] ss:$8 sps:$4 sm:$0xff]  }
 0x1d9   : > { %v1181_v15 = vld [vmem:[%s1759_s4 + $0xa4] ss:$8 sps:$4 sm:$0xff]   ;;  %s1977_s10 = sld [smem:[#allocation18_spill]]  ;;  %v1183_v16 = vld [vmem:[%s1759_s4 + $0xa0] ss:$8 sps:$4 sm:$0xff]   ;;  %v483_v23 = vshrl.u32 %v482_v22, 7 }
 0x1da   : > { %667 = vmatpush1.bf16.msra.mxu0 %v1150_v57  ;;  %v1184_v17 = vld [vmem:[%s1759_s4 + $0x94] ss:$8 sps:$4 sm:$0xff]   ;;  %s1978_s24 = sld [smem:[#allocation19_spill]]  ;;  %v1186_v18 = vld [vmem:[%s1759_s4 + $0x90] ss:$8 sps:$4 sm:$0xff]   ;;  %s738_s12 = sshll.u32 %s1779_s14, 4  ;;  %s1829_s12 = int_to_ptr.vmem [resolvable:$true] %s738_s12 }
 0x1db   : > { %668 = vmatprep.subr.bf16.mxu0 %v1151_v58  ;;  %v1187_v19 = vld [vmem:[%s1759_s4 + $0x84] ss:$8 sps:$4 sm:$0xff]   ;;  %v1189_v20 = vld [vmem:[%s1759_s4 + $0x80] ss:$8 sps:$4 sm:$0xff]   ;;  %v484_v24 = vsub.s32 0, %v483_v23  ;;  %v488_v25 = vsub.s32 1, %v483_v23 }
 0x1dc   : > { %v1190_v21 = vld [vmem:[#allocation2] ss:$8 sps:$4 sm:$0xff]   ;;  %s1980_s13 = sld [smem:[#allocation21_spill]] }
 0x1dd   : > { %v480_v26 = vld [vmem:[%s355_s5] sm:$0x3]  ;;  %s1981_s16 = sld [smem:[#allocation31_spill]]  ;;  %s1834_s5 = scalar_lea.sflag [#allocation5], %s347_s18 }
 0x1de   : > { %669 = vmatpush1.bf16.msra.mxu0 %v1153_v59  ;;  %v485_v27 = vrot.slane %v480_v26, %v484_v24  ;;  %v489_v28 = vrot.slane %v480_v26, %v488_v25 }
 0x1df   : > { %670 = vmatprep.subr.bf16.mxu0 %v1154_v60  ;;  %s960_s9 = smul.u32 12, %s1977_s10  ;;  %s1301_s10 = scalar_lea.vmem %s1829_s12, 256 }
 0x1e0   : > { %s961_s17 = smul.u32 24, %s1978_s24  ;;  %p1302_p5 = scmp.ne.s32.totalorder %s1829_s12, %s1301_s10 }
 0x1e1   : > { %s733_s15 = sadd.s32 %s960_s9, %s1767_s29  ;;  %s1480_s24 = smov [#allocation11]  }
 0x1e2   : > { %671 = vmatpush1.bf16.msra.mxu0 %v1156_v61  ;;  %s735_s4 = sadd.s32 %s961_s17, %s733_s15  ;;  %p1982_p10 = scmp.ne.s32.totalorder %s1980_s13, 0 }
 0x1e3   : > { %672 = vmatprep.subr.bf16.mxu0 %v1157_v62  ;;  %s951_s11 = sshll.u32 %s735_s4, 6  ;;  %s1305_s9 = sshll.u32 %s1480_s24, 4  ;;  %s1306_s9 = int_to_ptr.vmem [resolvable:$false] %s1305_s9 }
 0x1e4   : > { %s1827_s1 = scalar_lea.hbm %s1981_s16, %s951_s11  ;;  %p1303_p12 = pnand %p1302_p5, %p1982_p10 }
 0x1e5   : > { %s1307_s7 = scalar_lea.vmem %s1306_s9, 512  ;;  %p1308_p6 = scmp.lt.s32.totalorder %s1829_s12, %s1306_s9 }
 0x1e6   : > { %673 = vmatpush1.bf16.msra.mxu0 %v1159_v63  ;;  %p1304_p0 = pneg %p1303_p12  ;;  %p1309_p7 = scmp.lt.s32.totalorder %s1307_s7, %s1301_s10 }
 0x1e7   : > { %674 = vmatprep.subr.bf16.mxu0 %v1160_v0 }
 0x1e8   : > { %p1310_p1 = por %p1309_p7, %p1308_p6 }
 0x1ea   : > { %675 = vmatpush1.bf16.msra.mxu0 %v1162_v2  ;;  %p1311_p9 = pnand %p1310_p1, %p1304_p0 }
 0x1eb   : > { %676 = vmatprep.subr.bf16.mxu0 %v1163_v3 }
 0x1ee   : > { %677 = vmatpush1.bf16.msra.mxu0 %v1165_v4 }
 0x1ef   : > { %678 = vmatprep.subr.bf16.mxu0 %v1166_v5 }
 0x1f2   : > { %679 = vmatpush2.bf16.msra.mxu0 %v1168_v6 }
 0x1f3   : > { %680 = vmatprep.subr.bf16.mxu0 %v1169_v7 }
 0x1f6   : > { %681 = vmatpush2.bf16.msra.mxu0 %v1171_v8 }
 0x1f7   : > { %682 = vmatprep.subr.bf16.mxu0 %v1172_v9 }
 0x1fa   : > { %683 = vmatpush2.bf16.msra.mxu0 %v1174_v10 }
 0x1fb   : > { %684 = vmatprep.subr.bf16.mxu0 %v1175_v11 }
 0x1fe   : > { %685 = vmatpush2.bf16.msra.mxu0 %v1177_v12 }
 0x1ff   : > { %686 = vmatprep.subr.bf16.mxu0 %v1178_v13 }
 0x202   : > { %687 = vmatpush2.bf16.msra.mxu0 %v1180_v14 }
 0x203   : > { %688 = vmatprep.subr.bf16.mxu0 %v1181_v15 }
 0x206   : > { %689 = vmatpush2.bf16.msra.mxu0 %v1183_v16 }
 0x207   : > { %690 = vmatprep.subr.bf16.mxu0 %v1184_v17 }
 0x20a   : > { %691 = vmatpush2.bf16.msra.mxu0 %v1186_v18 }
 0x20b   : > { %692 = vmatprep.subr.bf16.mxu0 %v1187_v19 }
 0x20e   : > { %693 = vmatpush2.bf16.msra.mxu0 %v1189_v20 }
 0x211   : > { %695 = vmatmul.mubr.bf16.vlgmr.msra.gmra.mxu0 %v1190_v21 }
 0x2d1   : > { %v696_v29 = vpop.f32.mrf.mxu0 }
 0x2d2   : > { %v697_v31 = vadd.f32 %v696_v29, %v485_v27 }
 0x2d3   : > { %v698_v30 = vpop.f32.mrf.mxu0 }
 0x2d4   : > { %v699_v32 = vadd.f32 %v698_v30, %v489_v28 }
 0x2d5   : > { %v700_v33 = vpop.f32.mrf.mxu0 }
 0x2d6   : > { %v958_v34 = vpack.c.bf16 %v699_v32, %v697_v31  ;;  %v701_v36 = vadd.f32 %v700_v33, %v485_v27 }
 0x2d7   : > { %v702_v35 = vpop.f32.mrf.mxu0 }
 0x2d8   : > { %717 = vst [vmem:[%s1779_s14] sm:$0xff] %v958_v34  ;;  %v703_v37 = vadd.f32 %v702_v35, %v489_v28 }
 0x2da   : > { %v959_v38 = vpack.c.bf16 %v703_v37, %v701_v36 }
 0x2dc   : > { %718 = vst [vmem:[%s1779_s14 + $0x8] sm:$0xff] %v959_v38 }
 0x2dd   : > { %1314 = shalt.err (!%p1311_p9)
}
 0x2de   : > { %s1315_s18 = scalar_lea.hbm %s1827_s1, 256  ;;  %s1319_s2 = scalar_lea.hbm %s1981_s16, 3072 }
 0x2df   : > { %p1316_p11 = scmp.ne.s32.totalorder %s1827_s1, %s1315_s18  ;;  %p1320_p3 = scmp.lt.s32.totalorder %s1827_s1, %s1981_s16 }
 0x2e0   : > { %p1321_p4 = scmp.lt.s32.totalorder %s1319_s2, %s1315_s18 }
 0x2e1   : > { %p1317_p13 = pnand %p1316_p11, %p1982_p10 }
 0x2e2   : > { %p1322_p8 = por %p1321_p4, %p1320_p3 }
 0x2e3   : > { %p1318_p2 = pneg %p1317_p13 }
 0x2e5   : > { %p1323_p5 = pnand %p1322_p8, %p1318_p2 }
 0x2e7   : > { %1326 = shalt.err (!%p1323_p5)
}
 0x2e8   : > { %s1481_s4 = smov 128   ;;  %s1482_s11 = smov 384  }
 0x2e9   : > { %s1483_s0 = smov 8  }
 0x2ea   : > { %974 = dma.vmem_to_hbm [thread:$0]  (%p1982_p10), %s1829_s12, 256, %s1827_s1, %s1834_s5, %s1481_s4, %s1482_s11, %s1483_s0  }
 0x2eb PF: > { %s1983_s29 = sld [smem:[#allocation16_spill]]  ;;  %p999_p12 = scmp.ge.s32.totalorder %s1469_s8, 2 }
 0x2ec   : > { %s1984_s10 = sld [smem:[#allocation22_spill]] }
 0x2f1   : > { %s753_s24 = sand.u32 1, %s1983_s29  }
 0x2f2   : > { %p1985_p0 = scmp.ne.s32.totalorder %s1984_s10, 0  ;;  %s754_s9 = scalar_lea.sflag [#allocation5], %s753_s24 }
 0x2f4   : > { %p991_p6 = pnand %p999_p12, %p1985_p0 }
 0x2f6   : > { %p992_p7 = pneg %p991_p6 }
 0x2f8   : > { %1404 = dma.done.wait (%p992_p7), %s754_s9, 256  }
 0x2f9   : > { %1406 = vsyncadd (%p992_p7), %s754_s9, 4294967040  ;;  %s25_s8 = sadd.s32 1, %s1469_s8   ;;  %s1987_s29 = sld [smem:[#allocation20_spill]] }
 0x2fa   : > { %p1862_p1 = scmp.ge.s32.totalorder %s25_s8, 14   ;;  %s1988_s13 = sld [smem:[#allocation23_spill]] }
 0x2fb   : > { %s1989_s12 = sld [smem:[#allocation24_spill]]  ;;  %s1991_s18 = smov %s1413_s19 }
 0x2fc   : > { %s1990_s1 = sld [smem:[#allocation25_spill]]  ;;  %s1993_s19 = smov %s1417_s20 }
 0x2fd   : > { %s1994_s20 = smov %s1736_s21  ;;  %s1995_s21 = smov %s1425_s22 }
 0x2fe   : > { %s1996_s22 = smov %s1429_s23  ;;  %s1997_s23 = smov %s1712_s27 }
 0x2ff   : > { %s1998_s24 = smov %s1437_s25  ;;  %s1999_s25 = smov %s1441_s26 }
 0x300   : > { %s2000_s26 = smov %s1731_s28  ;;  %s2001_s27 = smov %s1457_s30 }
 0x301   : > { %s2002_s28 = smov %s1461_s6  ;;  %s2003_s30 = smov %s1988_s13 }
 0x302   : > { %s2004_s6 = smov %s1989_s12  ;;  %s2005_s7 = smov %s1990_s1 }
 0x303   :  { %24 = sbr.rel (!%p1862_p1) target bundleno = 21 (0x15), region = 113 }
 0x308   :  { %759 = vsyncpa [#allocation4], 1 }
 0x309   :  { %761 = vsyncpa [#allocation4 + $0x1], 1 }
 0x30a   :  { %762 = vsyncpa [#allocation7], 1 }
 0x30b   :  { %763 = vsyncpa [#allocation10], 1 }
 0x30c   :  { %765 = vsyncpa [#allocation10 + $0x1], 1 }
 0x30d   :  { %766 = vsyncpa [#allocation5], 1 }
 0x30e   :  { %768 = vsyncpa [#allocation5 + $0x1], 1 }

</bundles_post_ra>
